<compile_context>
chip_gen: v6e
topology: v6e:2x2x1
jax: 0.10.0
libtpu: 0.0.40
codegen_flags: <defaults>
</compile_context>

<pallas_src>
import functools

import jax
import jax.numpy as jnp
from jax.experimental import pallas as pl
from jax.experimental.pallas import tpu as pltpu

EPS = 1e-5
MXU_DTYPE = jnp.bfloat16   # MXU operand dtype; accumulation stays fp32.


def _layernorm(x, gamma, beta):
    mu = jnp.mean(x, axis=-1, keepdims=True)
    var = jnp.mean((x - mu) * (x - mu), axis=-1, keepdims=True)
    return (x - mu) * jax.lax.rsqrt(var + EPS) * gamma + beta


def _mm(a, w):
    """Matmul with bf16 (or w.dtype) operands and fp32 accumulation."""
    return jnp.dot(a.astype(w.dtype), w, preferred_element_type=jnp.float32)


def smlp_encoder_kernel(
    x_ref, mask_ref,
    wqg_ref, bqg_ref, wk_ref, bk_ref, wv_ref, bv_ref,
    wc_ref, bc_ref, wo_ref, bo_ref,
    g1_ref, be1_ref, g2_ref, be2_ref,
    w1_ref, bf1_ref, w2_ref, bf2_ref,
    o_ref,
):
    x3 = x_ref[...]                      # (TB, S, D) fp32
    valid = mask_ref[...]                # (TB, S, 1) fp32, 1 == keep
    tb, s, d = x3.shape
    x = x3.reshape(tb * s, d)

    # --- SMLP mixer block (pre-norm) ---
    residual = x
    y = _layernorm(x, g1_ref[...], be1_ref[...])               # fp32

    gate = jax.nn.sigmoid(_mm(y, wqg_ref[...]) + bqg_ref[...])  # folded q->gate
    v = _mm(y, wv_ref[...]) + bv_ref[...]

    # padding-masked mean pooling over the sequence (per batch), then project.
    y3 = y.reshape(tb, s, d)
    counts = jnp.maximum(jnp.sum(valid, axis=1), 1.0)          # (TB, 1)
    ypool = jnp.sum(y3 * valid, axis=1) / counts               # (TB, D)
    kpool = _mm(ypool, wk_ref[...]) + bk_ref[...]              # (TB, KD)
    ctx_b = _mm(kpool, wc_ref[...]) + bc_ref[...]              # (TB, D)
    ctx = jnp.broadcast_to(ctx_b[:, None, :], (tb, s, d)).reshape(tb * s, d)

    mixed = v * gate + ctx
    smix = _mm(mixed, wo_ref[...]) + bo_ref[...]
    x = residual + smix

    # --- FFN block (has_ffn = True, pre-norm) ---
    residual = x
    y2 = _layernorm(x, g2_ref[...], be2_ref[...])
    h = jnp.maximum(_mm(y2, w1_ref[...]) + bf1_ref[...], 0.0)
    f = _mm(h, w2_ref[...]) + bf2_ref[...]
    x = residual + f

    o_ref[...] = x.reshape(tb, s, d)


def init_params(key, embed_dim, ffn_dim, q_dim, k_dim):
    ks = jax.random.split(key, 18)
    sc = lambda n: 1.0 / jnp.sqrt(jnp.float32(n))
    nrm = lambda k, shp, s: jax.random.normal(k, shp, jnp.float32) * s
    return {
        "wq": nrm(ks[0], (embed_dim, q_dim), sc(embed_dim)),
        "bq": nrm(ks[1], (1, q_dim), 0.02),
        "wk": nrm(ks[2], (embed_dim, k_dim), sc(embed_dim)),
        "bk": nrm(ks[3], (1, k_dim), 0.02),
        "wv": nrm(ks[4], (embed_dim, embed_dim), sc(embed_dim)),
        "bv": nrm(ks[5], (1, embed_dim), 0.02),
        "wg": nrm(ks[6], (q_dim, embed_dim), sc(q_dim)),
        "bg": nrm(ks[7], (1, embed_dim), 0.02),
        "wc": nrm(ks[8], (k_dim, embed_dim), sc(k_dim)),
        "bc": nrm(ks[9], (1, embed_dim), 0.02),
        "wo": nrm(ks[10], (embed_dim, embed_dim), sc(embed_dim)),
        "bo": nrm(ks[11], (1, embed_dim), 0.02),
        "g1": jnp.ones((1, embed_dim), jnp.float32),
        "be1": jnp.zeros((1, embed_dim), jnp.float32),
        "g2": jnp.ones((1, embed_dim), jnp.float32),
        "be2": jnp.zeros((1, embed_dim), jnp.float32),
        "w1": nrm(ks[12], (embed_dim, ffn_dim), sc(embed_dim)),
        "bf1": nrm(ks[13], (1, ffn_dim), 0.02),
        "w2": nrm(ks[14], (ffn_dim, embed_dim), sc(ffn_dim)),
        "bf2": nrm(ks[15], (1, embed_dim), 0.02),
    }


def _prep_weights(params, mxu_dtype=MXU_DTYPE):
    """Fold the low-rank gate path and cast MXU weights to bf16."""
    p = params
    wqg = jnp.dot(p["wq"], p["wg"], preferred_element_type=jnp.float32)
    bqg = jnp.dot(p["bq"], p["wg"], preferred_element_type=jnp.float32) + p["bg"]
    f32 = jnp.float32
    return [
        wqg.astype(mxu_dtype), bqg.astype(f32),
        p["wk"].astype(mxu_dtype), p["bk"].astype(f32),
        p["wv"].astype(mxu_dtype), p["bv"].astype(f32),
        p["wc"].astype(mxu_dtype), p["bc"].astype(f32),
        p["wo"].astype(mxu_dtype), p["bo"].astype(f32),
        p["g1"].astype(f32), p["be1"].astype(f32),
        p["g2"].astype(f32), p["be2"].astype(f32),
        p["w1"].astype(mxu_dtype), p["bf1"].astype(f32),
        p["w2"].astype(mxu_dtype), p["bf2"].astype(f32),
    ]


@functools.partial(jax.jit, static_argnames=("tile_b",))
def smlp_encoder_layer(x, encoder_padding_mask, params, *, tile_b=1):
    """x: (seq, batch, embed); encoder_padding_mask: (batch, seq), 1 == pad."""
    S, B, D = x.shape
    assert B % tile_b == 0, "batch must be divisible by tile_b"
    xb = jnp.transpose(x, (1, 0, 2)).astype(jnp.float32)          # (B, S, D)
    valid = (1.0 - encoder_padding_mask.astype(jnp.float32)).reshape(B, S, 1)

    weights = _prep_weights(params)

    act_map = lambda b: (b, 0, 0)
    x_spec = pl.BlockSpec((tile_b, S, D), act_map)
    m_spec = pl.BlockSpec((tile_b, S, 1), act_map)
    # Constant index_map: weights stay VMEM-resident across grid steps.
    w_specs = [pl.BlockSpec(w.shape, lambda b: (0, 0)) for w in weights]

    out = pl.pallas_call(
        smlp_encoder_kernel,
        out_shape=jax.ShapeDtypeStruct((B, S, D), jnp.float32),
        grid_spec=pltpu.PrefetchScalarGridSpec(
            num_scalar_prefetch=0,
            grid=(B // tile_b,),
            in_specs=[x_spec, m_spec] + w_specs,
            out_specs=x_spec,
        ),
        compiler_params=pltpu.CompilerParams(
            dimension_semantics=("parallel",),       # megacore on v7x
            vmem_limit_bytes=48 * 1024 * 1024,       # fits v7x's 64 MiB VMEM
        ),
    )(xb, valid, *weights)
    return jnp.transpose(out, (1, 0, 2))


def reference_forward(x, encoder_padding_mask, params, mxu_dtype=MXU_DTYPE):
    """Pure-JAX reference with identical math (fold + bf16 MXU operands)."""
    p = params
    xb = jnp.transpose(x, (1, 0, 2)).astype(jnp.float32)          # (B, S, D)
    valid = (1.0 - encoder_padding_mask.astype(jnp.float32))[..., None]

    wqg = jnp.dot(p["wq"], p["wg"]).astype(mxu_dtype)
    bqg = jnp.dot(p["bq"], p["wg"]) + p["bg"]
    wk, wv = p["wk"].astype(mxu_dtype), p["wv"].astype(mxu_dtype)
    wc, wo = p["wc"].astype(mxu_dtype), p["wo"].astype(mxu_dtype)
    w1, w2 = p["w1"].astype(mxu_dtype), p["w2"].astype(mxu_dtype)

    def mm(a, w):
        return jnp.dot(a.astype(w.dtype), w, preferred_element_type=jnp.float32)

    residual = xb
    y = _layernorm(xb, p["g1"], p["be1"])
    gate = jax.nn.sigmoid(mm(y, wqg) + bqg)
    v = mm(y, wv) + p["bv"]
    counts = jnp.maximum(jnp.sum(valid, axis=1), 1.0)             # (B, 1)
    ypool = jnp.sum(y * valid, axis=1) / counts                   # (B, D)
    kpool = mm(ypool, wk) + p["bk"]
    ctx = (mm(kpool, wc) + p["bc"])[:, None, :]                   # (B, 1, D)
    smix = mm(v * gate + ctx, wo) + p["bo"]
    xb = residual + smix

    residual = xb
    y2 = _layernorm(xb, p["g2"], p["be2"])
    h = jnp.maximum(mm(y2, w1) + p["bf1"], 0.0)
    xb = residual + (mm(h, w2) + p["bf2"])
    return jnp.transpose(xb, (1, 0, 2))


if __name__ == "__main__":
    # Small but lane-friendly shapes (D multiple of 128).
    S, B, D, F, QD, KD = 8, 2, 128, 256, 64, 128

    key = jax.random.PRNGKey(0)
    k_x, k_p = jax.random.split(key)
    x = jax.random.normal(k_x, (S, B, D), jnp.float32)
    # batch 1 has its last 2 positions padded.
    pad = jnp.zeros((B, S), jnp.float32).at[1, -2:].set(1.0)

    params = init_params(k_p, D, F, QD, KD)

    out = smlp_encoder_layer(x, pad, params, tile_b=1)
    out = jax.block_until_ready(out)

    ref = reference_forward(x, pad, params)
    assert out.shape == (S, B, D)
    assert jnp.allclose(out, ref, atol=1e-2, rtol=1e-2), "mismatch vs reference"
    print("KERNEL_OK")
</pallas_src>

<mosaic_0001>
module attributes {stable_mosaic.version = 11 : i64} {
  func.func @smlp_encoder_kernel(%arg0: i32, %arg1: memref<1x8x128xf32, #tpu.memory_space<vmem>>, %arg2: memref<1x8x1xf32, #tpu.memory_space<vmem>>, %arg3: memref<128x128xbf16, #tpu.memory_space<vmem>>, %arg4: memref<1x128xf32, #tpu.memory_space<vmem>>, %arg5: memref<128x128xbf16, #tpu.memory_space<vmem>>, %arg6: memref<1x128xf32, #tpu.memory_space<vmem>>, %arg7: memref<128x128xbf16, #tpu.memory_space<vmem>>, %arg8: memref<1x128xf32, #tpu.memory_space<vmem>>, %arg9: memref<128x128xbf16, #tpu.memory_space<vmem>>, %arg10: memref<1x128xf32, #tpu.memory_space<vmem>>, %arg11: memref<128x128xbf16, #tpu.memory_space<vmem>>, %arg12: memref<1x128xf32, #tpu.memory_space<vmem>>, %arg13: memref<1x128xf32, #tpu.memory_space<vmem>>, %arg14: memref<1x128xf32, #tpu.memory_space<vmem>>, %arg15: memref<1x128xf32, #tpu.memory_space<vmem>>, %arg16: memref<1x128xf32, #tpu.memory_space<vmem>>, %arg17: memref<128x256xbf16, #tpu.memory_space<vmem>>, %arg18: memref<1x256xf32, #tpu.memory_space<vmem>>, %arg19: memref<256x128xbf16, #tpu.memory_space<vmem>>, %arg20: memref<1x128xf32, #tpu.memory_space<vmem>>, %arg21: memref<1x8x128xf32, #tpu.memory_space<vmem>>) attributes {dimension_semantics = [#tpu.dimension_semantics<parallel>], iteration_bounds = array<i64: 2>, scalar_prefetch = 0 : i64, scratch_operands = 0 : i64, tpu.core_type = #tpu.core_type<tc>, window_params = [{transform_indices = @transform_0, window_bounds = array<i64: 1, 8, 128>}, {transform_indices = @transform_1, window_bounds = array<i64: 1, 8, 1>}, {pipeline_mode = #tpu.pipeline_mode<synchronous>, transform_indices = @transform_2, window_bounds = array<i64: 128, 128>}, {pipeline_mode = #tpu.pipeline_mode<synchronous>, transform_indices = @transform_3, window_bounds = array<i64: 1, 128>}, {pipeline_mode = #tpu.pipeline_mode<synchronous>, transform_indices = @transform_4, window_bounds = array<i64: 128, 128>}, {pipeline_mode = #tpu.pipeline_mode<synchronous>, transform_indices = @transform_5, window_bounds = array<i64: 1, 128>}, {pipeline_mode = #tpu.pipeline_mode<synchronous>, transform_indices = @transform_6, window_bounds = array<i64: 128, 128>}, {pipeline_mode = #tpu.pipeline_mode<synchronous>, transform_indices = @transform_7, window_bounds = array<i64: 1, 128>}, {pipeline_mode = #tpu.pipeline_mode<synchronous>, transform_indices = @transform_8, window_bounds = array<i64: 128, 128>}, {pipeline_mode = #tpu.pipeline_mode<synchronous>, transform_indices = @transform_9, window_bounds = array<i64: 1, 128>}, {pipeline_mode = #tpu.pipeline_mode<synchronous>, transform_indices = @transform_10, window_bounds = array<i64: 128, 128>}, {pipeline_mode = #tpu.pipeline_mode<synchronous>, transform_indices = @transform_11, window_bounds = array<i64: 1, 128>}, {pipeline_mode = #tpu.pipeline_mode<synchronous>, transform_indices = @transform_12, window_bounds = array<i64: 1, 128>}, {pipeline_mode = #tpu.pipeline_mode<synchronous>, transform_indices = @transform_13, window_bounds = array<i64: 1, 128>}, {pipeline_mode = #tpu.pipeline_mode<synchronous>, transform_indices = @transform_14, window_bounds = array<i64: 1, 128>}, {pipeline_mode = #tpu.pipeline_mode<synchronous>, transform_indices = @transform_15, window_bounds = array<i64: 1, 128>}, {pipeline_mode = #tpu.pipeline_mode<synchronous>, transform_indices = @transform_16, window_bounds = array<i64: 128, 256>}, {pipeline_mode = #tpu.pipeline_mode<synchronous>, transform_indices = @transform_17, window_bounds = array<i64: 1, 256>}, {pipeline_mode = #tpu.pipeline_mode<synchronous>, transform_indices = @transform_18, window_bounds = array<i64: 256, 128>}, {pipeline_mode = #tpu.pipeline_mode<synchronous>, transform_indices = @transform_19, window_bounds = array<i64: 1, 128>}, {transform_indices = @transform_20, window_bounds = array<i64: 1, 8, 128>}]} {
    %c0 = arith.constant 0 : index
    %c0_0 = arith.constant 0 : index
    %c0_1 = arith.constant 0 : index
    %0 = vector.load %arg1[%c0, %c0_0, %c0_1] : memref<1x8x128xf32, #tpu.memory_space<vmem>>, vector<1x8x128xf32>
    %c0_2 = arith.constant 0 : index
    %c0_3 = arith.constant 0 : index
    %c0_4 = arith.constant 0 : index
    %1 = vector.load %arg2[%c0_2, %c0_3, %c0_4] : memref<1x8x1xf32, #tpu.memory_space<vmem>>, vector<1x8x1xf32>
    %2 = vector.shape_cast %0 : vector<1x8x128xf32> to vector<8x128xf32>
    %c0_5 = arith.constant 0 : index
    %c0_6 = arith.constant 0 : index
    %3 = vector.load %arg13[%c0_5, %c0_6] : memref<1x128xf32, #tpu.memory_space<vmem>>, vector<1x128xf32>
    %c0_7 = arith.constant 0 : index
    %c0_8 = arith.constant 0 : index
    %4 = vector.load %arg14[%c0_7, %c0_8] : memref<1x128xf32, #tpu.memory_space<vmem>>, vector<1x128xf32>
    %cst = arith.constant dense<0.000000e+00> : vector<8xf32>
    %5 = vector.multi_reduction <add>, %2, %cst [1] : vector<8x128xf32> to vector<8xf32>
    %6 = vector.shape_cast %5 : vector<8xf32> to vector<8x1xf32>
    %cst_9 = arith.constant 1.280000e+02 : f32
    %7 = vector.broadcast %cst_9 : f32 to vector<8x1xf32>
    %8 = arith.divf %6, %7 : vector<8x1xf32>
    %9 = vector.broadcast %8 : vector<8x1xf32> to vector<8x128xf32>
    %10 = arith.subf %2, %9 : vector<8x128xf32>
    %11 = vector.broadcast %8 : vector<8x1xf32> to vector<8x128xf32>
    %12 = arith.subf %2, %11 : vector<8x128xf32>
    %13 = arith.mulf %10, %12 : vector<8x128xf32>
    %cst_10 = arith.constant dense<0.000000e+00> : vector<8xf32>
    %14 = vector.multi_reduction <add>, %13, %cst_10 [1] : vector<8x128xf32> to vector<8xf32>
    %15 = vector.shape_cast %14 : vector<8xf32> to vector<8x1xf32>
    %cst_11 = arith.constant 1.280000e+02 : f32
    %16 = vector.broadcast %cst_11 : f32 to vector<8x1xf32>
    %17 = arith.divf %15, %16 : vector<8x1xf32>
    %18 = vector.broadcast %8 : vector<8x1xf32> to vector<8x128xf32>
    %19 = arith.subf %2, %18 : vector<8x128xf32>
    %cst_12 = arith.constant 9.99999974E-6 : f32
    %20 = vector.broadcast %cst_12 : f32 to vector<8x1xf32>
    %21 = arith.addf %17, %20 : vector<8x1xf32>
    %22 = math.rsqrt %21 : vector<8x1xf32>
    %23 = vector.broadcast %22 : vector<8x1xf32> to vector<8x128xf32>
    %24 = arith.mulf %19, %23 : vector<8x128xf32>
    %25 = vector.broadcast %3 : vector<1x128xf32> to vector<8x128xf32>
    %26 = arith.mulf %24, %25 : vector<8x128xf32>
    %27 = vector.broadcast %4 : vector<1x128xf32> to vector<8x128xf32>
    %28 = arith.addf %26, %27 : vector<8x128xf32>
    %c0_13 = arith.constant 0 : index
    %c0_14 = arith.constant 0 : index
    %29 = vector.load %arg3[%c0_13, %c0_14] : memref<128x128xbf16, #tpu.memory_space<vmem>>, vector<128x128xbf16>
    %30 = arith.truncf %28 : vector<8x128xf32> to vector<8x128xbf16>
    %cst_15 = arith.constant dense<0.000000e+00> : vector<8x128xf32>
    %31 = tpu.matmul %30, %29, %cst_15 {dimension_numbers = #tpu.dot_dimension_numbers<[1], [0], [0], [1], [0, 0, 1, 1], [], []>} : vector<8x128xbf16>, vector<128x128xbf16>, vector<8x128xf32> -> vector<8x128xf32>
    %c0_16 = arith.constant 0 : index
    %c0_17 = arith.constant 0 : index
    %32 = vector.load %arg4[%c0_16, %c0_17] : memref<1x128xf32, #tpu.memory_space<vmem>>, vector<1x128xf32>
    %33 = vector.broadcast %32 : vector<1x128xf32> to vector<8x128xf32>
    %34 = arith.addf %31, %33 : vector<8x128xf32>
    %35 = arith.negf %34 : vector<8x128xf32>
    %36 = math.exp %35 : vector<8x128xf32>
    %cst_18 = arith.constant 1.000000e+00 : f32
    %37 = vector.broadcast %cst_18 : f32 to vector<8x128xf32>
    %38 = arith.addf %37, %36 : vector<8x128xf32>
    %39 = arith.divf %37, %38 : vector<8x128xf32>
    %c0_19 = arith.constant 0 : index
    %c0_20 = arith.constant 0 : index
    %40 = vector.load %arg7[%c0_19, %c0_20] : memref<128x128xbf16, #tpu.memory_space<vmem>>, vector<128x128xbf16>
    %41 = arith.truncf %28 : vector<8x128xf32> to vector<8x128xbf16>
    %cst_21 = arith.constant dense<0.000000e+00> : vector<8x128xf32>
    %42 = tpu.matmul %41, %40, %cst_21 {dimension_numbers = #tpu.dot_dimension_numbers<[1], [0], [0], [1], [0, 0, 1, 1], [], []>} : vector<8x128xbf16>, vector<128x128xbf16>, vector<8x128xf32> -> vector<8x128xf32>
    %c0_22 = arith.constant 0 : index
    %c0_23 = arith.constant 0 : index
    %43 = vector.load %arg8[%c0_22, %c0_23] : memref<1x128xf32, #tpu.memory_space<vmem>>, vector<1x128xf32>
    %44 = vector.broadcast %43 : vector<1x128xf32> to vector<8x128xf32>
    %45 = arith.addf %42, %44 : vector<8x128xf32>
    %46 = vector.shape_cast %28 : vector<8x128xf32> to vector<1x8x128xf32>
    %cst_24 = arith.constant dense<0.000000e+00> : vector<1x1xf32>
    %47 = vector.multi_reduction <add>, %1, %cst_24 [1] : vector<1x8x1xf32> to vector<1x1xf32>
    %cst_25 = arith.constant 1.000000e+00 : f32
    %48 = vector.broadcast %cst_25 : f32 to vector<1x1xf32>
    %49 = arith.maximumf %47, %48 : vector<1x1xf32>
    %50 = vector.broadcast %1 : vector<1x8x1xf32> to vector<1x8x128xf32>
    %51 = arith.mulf %46, %50 : vector<1x8x128xf32>
    %cst_26 = arith.constant dense<0.000000e+00> : vector<1x128xf32>
    %52 = vector.multi_reduction <add>, %51, %cst_26 [1] : vector<1x8x128xf32> to vector<1x128xf32>
    %53 = vector.broadcast %49 : vector<1x1xf32> to vector<1x128xf32>
    %54 = arith.divf %52, %53 : vector<1x128xf32>
    %c0_27 = arith.constant 0 : index
    %c0_28 = arith.constant 0 : index
    %55 = vector.load %arg5[%c0_27, %c0_28] : memref<128x128xbf16, #tpu.memory_space<vmem>>, vector<128x128xbf16>
    %56 = arith.truncf %54 : vector<1x128xf32> to vector<1x128xbf16>
    %cst_29 = arith.constant dense<0.000000e+00> : vector<1x128xf32>
    %57 = tpu.matmul %56, %55, %cst_29 {dimension_numbers = #tpu.dot_dimension_numbers<[1], [0], [0], [1], [0, 0, 1, 1], [], []>} : vector<1x128xbf16>, vector<128x128xbf16>, vector<1x128xf32> -> vector<1x128xf32>
    %c0_30 = arith.constant 0 : index
    %c0_31 = arith.constant 0 : index
    %58 = vector.load %arg6[%c0_30, %c0_31] : memref<1x128xf32, #tpu.memory_space<vmem>>, vector<1x128xf32>
    %59 = arith.addf %57, %58 : vector<1x128xf32>
    %c0_32 = arith.constant 0 : index
    %c0_33 = arith.constant 0 : index
    %60 = vector.load %arg9[%c0_32, %c0_33] : memref<128x128xbf16, #tpu.memory_space<vmem>>, vector<128x128xbf16>
    %61 = arith.truncf %59 : vector<1x128xf32> to vector<1x128xbf16>
    %cst_34 = arith.constant dense<0.000000e+00> : vector<1x128xf32>
    %62 = tpu.matmul %61, %60, %cst_34 {dimension_numbers = #tpu.dot_dimension_numbers<[1], [0], [0], [1], [0, 0, 1, 1], [], []>} : vector<1x128xbf16>, vector<128x128xbf16>, vector<1x128xf32> -> vector<1x128xf32>
    %c0_35 = arith.constant 0 : index
    %c0_36 = arith.constant 0 : index
    %63 = vector.load %arg10[%c0_35, %c0_36] : memref<1x128xf32, #tpu.memory_space<vmem>>, vector<1x128xf32>
    %64 = arith.addf %62, %63 : vector<1x128xf32>
    %65 = vector.shape_cast %64 : vector<1x128xf32> to vector<1x1x128xf32>
    %66 = vector.shape_cast %65 : vector<1x1x128xf32> to vector<1x1x128xf32>
    %67 = vector.broadcast %66 : vector<1x1x128xf32> to vector<1x8x128xf32>
    %68 = vector.shape_cast %67 : vector<1x8x128xf32> to vector<8x128xf32>
    %69 = arith.mulf %45, %39 : vector<8x128xf32>
    %70 = arith.addf %69, %68 : vector<8x128xf32>
    %c0_37 = arith.constant 0 : index
    %c0_38 = arith.constant 0 : index
    %71 = vector.load %arg11[%c0_37, %c0_38] : memref<128x128xbf16, #tpu.memory_space<vmem>>, vector<128x128xbf16>
    %72 = arith.truncf %70 : vector<8x128xf32> to vector<8x128xbf16>
    %cst_39 = arith.constant dense<0.000000e+00> : vector<8x128xf32>
    %73 = tpu.matmul %72, %71, %cst_39 {dimension_numbers = #tpu.dot_dimension_numbers<[1], [0], [0], [1], [0, 0, 1, 1], [], []>} : vector<8x128xbf16>, vector<128x128xbf16>, vector<8x128xf32> -> vector<8x128xf32>
    %c0_40 = arith.constant 0 : index
    %c0_41 = arith.constant 0 : index
    %74 = vector.load %arg12[%c0_40, %c0_41] : memref<1x128xf32, #tpu.memory_space<vmem>>, vector<1x128xf32>
    %75 = vector.broadcast %74 : vector<1x128xf32> to vector<8x128xf32>
    %76 = arith.addf %73, %75 : vector<8x128xf32>
    %77 = arith.addf %2, %76 : vector<8x128xf32>
    %c0_42 = arith.constant 0 : index
    %c0_43 = arith.constant 0 : index
    %78 = vector.load %arg15[%c0_42, %c0_43] : memref<1x128xf32, #tpu.memory_space<vmem>>, vector<1x128xf32>
    %c0_44 = arith.constant 0 : index
    %c0_45 = arith.constant 0 : index
    %79 = vector.load %arg16[%c0_44, %c0_45] : memref<1x128xf32, #tpu.memory_space<vmem>>, vector<1x128xf32>
    %cst_46 = arith.constant dense<0.000000e+00> : vector<8xf32>
    %80 = vector.multi_reduction <add>, %77, %cst_46 [1] : vector<8x128xf32> to vector<8xf32>
    %81 = vector.shape_cast %80 : vector<8xf32> to vector<8x1xf32>
    %cst_47 = arith.constant 1.280000e+02 : f32
    %82 = vector.broadcast %cst_47 : f32 to vector<8x1xf32>
    %83 = arith.divf %81, %82 : vector<8x1xf32>
    %84 = vector.broadcast %83 : vector<8x1xf32> to vector<8x128xf32>
    %85 = arith.subf %77, %84 : vector<8x128xf32>
    %86 = vector.broadcast %83 : vector<8x1xf32> to vector<8x128xf32>
    %87 = arith.subf %77, %86 : vector<8x128xf32>
    %88 = arith.mulf %85, %87 : vector<8x128xf32>
    %cst_48 = arith.constant dense<0.000000e+00> : vector<8xf32>
    %89 = vector.multi_reduction <add>, %88, %cst_48 [1] : vector<8x128xf32> to vector<8xf32>
    %90 = vector.shape_cast %89 : vector<8xf32> to vector<8x1xf32>
    %cst_49 = arith.constant 1.280000e+02 : f32
    %91 = vector.broadcast %cst_49 : f32 to vector<8x1xf32>
    %92 = arith.divf %90, %91 : vector<8x1xf32>
    %93 = vector.broadcast %83 : vector<8x1xf32> to vector<8x128xf32>
    %94 = arith.subf %77, %93 : vector<8x128xf32>
    %cst_50 = arith.constant 9.99999974E-6 : f32
    %95 = vector.broadcast %cst_50 : f32 to vector<8x1xf32>
    %96 = arith.addf %92, %95 : vector<8x1xf32>
    %97 = math.rsqrt %96 : vector<8x1xf32>
    %98 = vector.broadcast %97 : vector<8x1xf32> to vector<8x128xf32>
    %99 = arith.mulf %94, %98 : vector<8x128xf32>
    %100 = vector.broadcast %78 : vector<1x128xf32> to vector<8x128xf32>
    %101 = arith.mulf %99, %100 : vector<8x128xf32>
    %102 = vector.broadcast %79 : vector<1x128xf32> to vector<8x128xf32>
    %103 = arith.addf %101, %102 : vector<8x128xf32>
    %c0_51 = arith.constant 0 : index
    %c0_52 = arith.constant 0 : index
    %104 = vector.load %arg17[%c0_51, %c0_52] : memref<128x256xbf16, #tpu.memory_space<vmem>>, vector<128x256xbf16>
    %105 = arith.truncf %103 : vector<8x128xf32> to vector<8x128xbf16>
    %cst_53 = arith.constant dense<0.000000e+00> : vector<8x256xf32>
    %106 = tpu.matmul %105, %104, %cst_53 {dimension_numbers = #tpu.dot_dimension_numbers<[1], [0], [0], [1], [0, 0, 1, 1], [], []>} : vector<8x128xbf16>, vector<128x256xbf16>, vector<8x256xf32> -> vector<8x256xf32>
    %c0_54 = arith.constant 0 : index
    %c0_55 = arith.constant 0 : index
    %107 = vector.load %arg18[%c0_54, %c0_55] : memref<1x256xf32, #tpu.memory_space<vmem>>, vector<1x256xf32>
    %108 = vector.broadcast %107 : vector<1x256xf32> to vector<8x256xf32>
    %109 = arith.addf %106, %108 : vector<8x256xf32>
    %cst_56 = arith.constant 0.000000e+00 : f32
    %110 = vector.broadcast %cst_56 : f32 to vector<8x256xf32>
    %111 = arith.maximumf %109, %110 : vector<8x256xf32>
    %c0_57 = arith.constant 0 : index
    %c0_58 = arith.constant 0 : index
    %112 = vector.load %arg19[%c0_57, %c0_58] : memref<256x128xbf16, #tpu.memory_space<vmem>>, vector<256x128xbf16>
    %113 = arith.truncf %111 : vector<8x256xf32> to vector<8x256xbf16>
    %cst_59 = arith.constant dense<0.000000e+00> : vector<8x128xf32>
    %114 = tpu.matmul %113, %112, %cst_59 {dimension_numbers = #tpu.dot_dimension_numbers<[1], [0], [0], [1], [0, 0, 1, 1], [], []>} : vector<8x256xbf16>, vector<256x128xbf16>, vector<8x128xf32> -> vector<8x128xf32>
    %c0_60 = arith.constant 0 : index
    %c0_61 = arith.constant 0 : index
    %115 = vector.load %arg20[%c0_60, %c0_61] : memref<1x128xf32, #tpu.memory_space<vmem>>, vector<1x128xf32>
    %116 = vector.broadcast %115 : vector<1x128xf32> to vector<8x128xf32>
    %117 = arith.addf %114, %116 : vector<8x128xf32>
    %118 = arith.addf %77, %117 : vector<8x128xf32>
    %119 = vector.shape_cast %118 : vector<8x128xf32> to vector<1x8x128xf32>
    %c0_62 = arith.constant 0 : index
    %c0_63 = arith.constant 0 : index
    %c0_64 = arith.constant 0 : index
    %120 = vector.load %arg21[%c0_62, %c0_63, %c0_64] : memref<1x8x128xf32, #tpu.memory_space<vmem>>, vector<1x8x128xf32>
    tpu.vector_store %arg21[%c0_62, %c0_63, %c0_64], %119 {strides = array<i32>} : memref<1x8x128xf32, #tpu.memory_space<vmem>>, vector<1x8x128xf32>,
    return
  }
  func.func @transform_0(%arg0: i32) -> (i32, i32, i32) {
    %c0_i32 = arith.constant 0 : i32
    %c0_i32_0 = arith.constant 0 : i32
    %c0_i32_1 = arith.constant 0 : i32
    return %arg0, %c0_i32, %c0_i32_0 : i32, i32, i32
  }
  func.func @transform_1(%arg0: i32) -> (i32, i32, i32) {
    %c0_i32 = arith.constant 0 : i32
    %c0_i32_0 = arith.constant 0 : i32
    %c0_i32_1 = arith.constant 0 : i32
    return %arg0, %c0_i32, %c0_i32_0 : i32, i32, i32
  }
  func.func @transform_2(%arg0: i32) -> (i32, i32) {
    %c0_i32 = arith.constant 0 : i32
    %c0_i32_0 = arith.constant 0 : i32
    %c0_i32_1 = arith.constant 0 : i32
    return %c0_i32, %c0_i32_0 : i32, i32
  }
  func.func @transform_3(%arg0: i32) -> (i32, i32) {
    %c0_i32 = arith.constant 0 : i32
    %c0_i32_0 = arith.constant 0 : i32
    %c0_i32_1 = arith.constant 0 : i32
    return %c0_i32, %c0_i32_0 : i32, i32
  }
  func.func @transform_4(%arg0: i32) -> (i32, i32) {
    %c0_i32 = arith.constant 0 : i32
    %c0_i32_0 = arith.constant 0 : i32
    %c0_i32_1 = arith.constant 0 : i32
    return %c0_i32, %c0_i32_0 : i32, i32
  }
  func.func @transform_5(%arg0: i32) -> (i32, i32) {
    %c0_i32 = arith.constant 0 : i32
    %c0_i32_0 = arith.constant 0 : i32
    %c0_i32_1 = arith.constant 0 : i32
    return %c0_i32, %c0_i32_0 : i32, i32
  }
  func.func @transform_6(%arg0: i32) -> (i32, i32) {
    %c0_i32 = arith.constant 0 : i32
    %c0_i32_0 = arith.constant 0 : i32
    %c0_i32_1 = arith.constant 0 : i32
    return %c0_i32, %c0_i32_0 : i32, i32
  }
  func.func @transform_7(%arg0: i32) -> (i32, i32) {
    %c0_i32 = arith.constant 0 : i32
    %c0_i32_0 = arith.constant 0 : i32
    %c0_i32_1 = arith.constant 0 : i32
    return %c0_i32, %c0_i32_0 : i32, i32
  }
  func.func @transform_8(%arg0: i32) -> (i32, i32) {
    %c0_i32 = arith.constant 0 : i32
    %c0_i32_0 = arith.constant 0 : i32
    %c0_i32_1 = arith.constant 0 : i32
    return %c0_i32, %c0_i32_0 : i32, i32
  }
  func.func @transform_9(%arg0: i32) -> (i32, i32) {
    %c0_i32 = arith.constant 0 : i32
    %c0_i32_0 = arith.constant 0 : i32
    %c0_i32_1 = arith.constant 0 : i32
    return %c0_i32, %c0_i32_0 : i32, i32
  }
  func.func @transform_10(%arg0: i32) -> (i32, i32) {
    %c0_i32 = arith.constant 0 : i32
    %c0_i32_0 = arith.constant 0 : i32
    %c0_i32_1 = arith.constant 0 : i32
    return %c0_i32, %c0_i32_0 : i32, i32
  }
  func.func @transform_11(%arg0: i32) -> (i32, i32) {
    %c0_i32 = arith.constant 0 : i32
    %c0_i32_0 = arith.constant 0 : i32
    %c0_i32_1 = arith.constant 0 : i32
    return %c0_i32, %c0_i32_0 : i32, i32
  }
  func.func @transform_12(%arg0: i32) -> (i32, i32) {
    %c0_i32 = arith.constant 0 : i32
    %c0_i32_0 = arith.constant 0 : i32
    %c0_i32_1 = arith.constant 0 : i32
    return %c0_i32, %c0_i32_0 : i32, i32
  }
  func.func @transform_13(%arg0: i32) -> (i32, i32) {
    %c0_i32 = arith.constant 0 : i32
    %c0_i32_0 = arith.constant 0 : i32
    %c0_i32_1 = arith.constant 0 : i32
    return %c0_i32, %c0_i32_0 : i32, i32
  }
  func.func @transform_14(%arg0: i32) -> (i32, i32) {
    %c0_i32 = arith.constant 0 : i32
    %c0_i32_0 = arith.constant 0 : i32
    %c0_i32_1 = arith.constant 0 : i32
    return %c0_i32, %c0_i32_0 : i32, i32
  }
  func.func @transform_15(%arg0: i32) -> (i32, i32) {
    %c0_i32 = arith.constant 0 : i32
    %c0_i32_0 = arith.constant 0 : i32
    %c0_i32_1 = arith.constant 0 : i32
    return %c0_i32, %c0_i32_0 : i32, i32
  }
  func.func @transform_16(%arg0: i32) -> (i32, i32) {
    %c0_i32 = arith.constant 0 : i32
    %c0_i32_0 = arith.constant 0 : i32
    %c0_i32_1 = arith.constant 0 : i32
    return %c0_i32, %c0_i32_0 : i32, i32
  }
  func.func @transform_17(%arg0: i32) -> (i32, i32) {
    %c0_i32 = arith.constant 0 : i32
    %c0_i32_0 = arith.constant 0 : i32
    %c0_i32_1 = arith.constant 0 : i32
    return %c0_i32, %c0_i32_0 : i32, i32
  }
  func.func @transform_18(%arg0: i32) -> (i32, i32) {
    %c0_i32 = arith.constant 0 : i32
    %c0_i32_0 = arith.constant 0 : i32
    %c0_i32_1 = arith.constant 0 : i32
    return %c0_i32, %c0_i32_0 : i32, i32
  }
  func.func @transform_19(%arg0: i32) -> (i32, i32) {
    %c0_i32 = arith.constant 0 : i32
    %c0_i32_0 = arith.constant 0 : i32
    %c0_i32_1 = arith.constant 0 : i32
    return %c0_i32, %c0_i32_0 : i32, i32
  }
  func.func @transform_20(%arg0: i32) -> (i32, i32, i32) {
    %c0_i32 = arith.constant 0 : i32
    %c0_i32_0 = arith.constant 0 : i32
    %c0_i32_1 = arith.constant 0 : i32
    return %arg0, %c0_i32, %c0_i32_0 : i32, i32, i32
  }
}

</mosaic_0001>

<bundles_post_ra>
// kernel: smlp_encoder_layer.1
= control target key start
LH: loop header
LB: loop body
LE: loop exit
PB: predicated region body
PF: predicated region fallthrough
CT: control target
= control target key end

     0   :  { %s2506_s0 = inlined_call_operand.vmem [shape: f32[2,8,128], index: 0, kind: input, shape index: {}]   ;;  %s2507_s1 = inlined_call_operand.vmem [shape: f32[2,8,1], index: 1, kind: input, shape index: {}]   ;;  %s2508_s2 = inlined_call_operand.vmem [shape: bf16[128,128], index: 2, kind: input, shape index: {}]   ;;  %s2509_s3 = inlined_call_operand.vmem [shape: f32[1,128], index: 3, kind: input, shape index: {}]   ;;  %s2510_s4 = inlined_call_operand.vmem [shape: bf16[128,128], index: 4, kind: input, shape index: {}]   ;;  %s2511_s5 = inlined_call_operand.vmem [shape: f32[1,128], index: 5, kind: input, shape index: {}]   ;;  %s2512_s6 = inlined_call_operand.vmem [shape: bf16[128,128], index: 6, kind: input, shape index: {}]   ;;  %s2513_s7 = inlined_call_operand.vmem [shape: f32[1,128], index: 7, kind: input, shape index: {}]   ;;  %s2514_s8 = inlined_call_operand.vmem [shape: bf16[128,128], index: 8, kind: input, shape index: {}]   ;;  %s2515_s9 = inlined_call_operand.vmem [shape: f32[1,128], index: 9, kind: input, shape index: {}]   ;;  %s2516_s10 = inlined_call_operand.vmem [shape: bf16[128,128], index: 10, kind: input, shape index: {}]   ;;  %s2517_s11 = inlined_call_operand.vmem [shape: f32[1,128], index: 11, kind: input, shape index: {}]   ;;  %s2518_s12 = inlined_call_operand.vmem [shape: f32[1,128], index: 12, kind: input, shape index: {}]   ;;  %s2519_s13 = inlined_call_operand.vmem [shape: f32[1,128], index: 13, kind: input, shape index: {}]   ;;  %s2520_s14 = inlined_call_operand.vmem [shape: f32[1,128], index: 14, kind: input, shape index: {}]   ;;  %s2521_s15 = inlined_call_operand.vmem [shape: f32[1,128], index: 15, kind: input, shape index: {}]   ;;  %s2522_s16 = inlined_call_operand.vmem [shape: bf16[128,256], index: 16, kind: input, shape index: {}]   ;;  %s2523_s17 = inlined_call_operand.vmem [shape: f32[1,256], index: 17, kind: input, shape index: {}]   ;;  %s2524_s18 = inlined_call_operand.vmem [shape: bf16[256,128], index: 18, kind: input, shape index: {}]   ;;  %s2525_s19 = inlined_call_operand.vmem [shape: f32[1,128], index: 19, kind: input, shape index: {}]   ;;  %s2526_s20 = inlined_call_operand.vmem [shape: f32[2,8,128], index: 20, kind: output, shape index: {}]  }
   0x1   :  { %2529 = sst [smem:[#allocation2_spill]] %s2506_s0 }
   0x2   :  { %2530 = sst [smem:[#allocation3_spill]] %s2507_s1  ;;  %s2161_s1 = smov 0  }
   0x3   :  { %2531 = sst [smem:[#allocation4_spill]] %s2508_s2 }
   0x4   :  { %2532 = sst [smem:[#allocation5_spill]] %s2509_s3 }
   0x5   :  { %2533 = sst [smem:[#allocation6_spill]] %s2510_s4 }
   0x6 LB: > { %s1684_s22 = sadd.s32 4294967295, %s2051_s1   ;;  %p1688_p0 = scmp.ge.s32.totalorder %s2051_s1, 1  ;;  %s2051_s1 = sphi %s2161_s1, %s30_s1  }
   0x7   : > { %p570_p1 = scmp.lt.s32.totalorder %s2051_s1, 3 }
   0x9   : > { %p571_p2 = pnand %p1688_p0, %p570_p1 }
   0xa   : > { %p630_p3 = scmp.lt.s32.totalorder (!%p571_p2), %s1684_s22, 1  ;;  %s2534_s25 = sld [smem:[#allocation2_spill]] (!%p571_p2) }
   0xb   : > { %574 = sbr.rel (%p571_p2) target bundleno = 1667 (0x683), region = 100  ;;  %s2535_s28 = sld [smem:[#allocation3_spill]] (!%p571_p2) }
   0xc   : > { %s2536_s0 = sld [smem:[#allocation4_spill]] (!%p571_p2) }
   0xd   : > { %s2537_s21 = sld [smem:[#allocation6_spill]] (!%p571_p2) }
  0x10   : > { %s2540_s22 = smov (!%p630_p3, %s1684_s22), 1  ;;  %vm902_vm0 = vcmask 7168   ;;  %v1956_v2 = vld [vmem:[%s2512_s6 + $0x38] sm:$0xff]   ;;  %v2053_v3 = vmov 0   ;;  %v2054_v5 = vmov 0.0   ;;  %v1958_v8 = vld [vmem:[%s2512_s6 + $0x30] sm:$0xff]  }
  0x11   : > { %s2169_s23 = sshll.u32 %s2540_s22, 3  ;;  %1953 = vset.pattern.permute.xlu1 %v2053_v3  ;;  %1842 = vmatprep.subr.bf16.mxu0 %v2054_v5  ;;  %v1960_v21 = vld [vmem:[%s2512_s6 + $0x28] sm:$0xff]   ;;  %v1962_v23 = vld [vmem:[%s2512_s6 + $0x20] sm:$0xff]   ;;  %v1964_v25 = vld [vmem:[%s2512_s6 + $0x18] sm:$0xff]   ;;  %vm2055_vm1 = vmmov 0   ;;  %s2538_s22 = sld [smem:[#allocation5_spill]] }
  0x12   : > { %s633_s3 = scalar_lea.vmem %s2534_s25, %s2169_s23  ;;  %s637_s4 = scalar_lea.vmem %s2535_s28, %s2169_s23  ;;  %v1955_v1 = vld [vmem:[%s2536_s0 + $0x38] sm:$0xff]   ;;  %v1957_v6 = vld [vmem:[%s2536_s0 + $0x30] sm:$0xff]   ;;  %1862 = vmatprep.subr.bf16.mxu1 %v2054_v5  ;;  %1954 = vset.pattern.permute.xlu0 %v2053_v3  ;;  %v1959_v20 = vld [vmem:[%s2536_s0 + $0x28] sm:$0xff]  }
  0x13   : > { %v2175_v0 = vld [vmem:[%s633_s3] sm:$0xff]  ;;  %1843 = vmatpush3.bf16.msra.mxu0 %v1955_v1  ;;  %1863 = vmatpush3.bf16.msra.mxu1 %v1956_v2  ;;  %v1963_v24 = vld [vmem:[%s2536_s0 + $0x18] sm:$0xff]   ;;  %v1965_v26 = vld [vmem:[%s2536_s0 + $0x10] sm:$0xff]   ;;  %s641_s30 = scalar_lea.vmem %s2526_s20, %s2169_s23 }
  0x14   : > { %647 = vadd.xlane.f32.xlu0 %v2175_v0  ;;  %v644_v4 = vld [vmem:[%s637_s4] sm:$0xff]  ;;  %1844 = vmatprep.subr.bf16.mxu0 %v2054_v5  ;;  %v1966_v27 = vld [vmem:[%s2512_s6 + $0x10] sm:$0xff]   ;;  %v1967_v28 = vld [vmem:[%s2536_s0 + $0x8] sm:$0xff]  }
  0x15   : > { %913 = vperm.xlu1 %1953, %v644_v4   ;;  %v903_v7 = vsel %vm902_vm0, %v644_v4, 0.0  ;;  %1864 = vmatprep.subr.bf16.mxu1 %v2054_v5  ;;  %v1961_v22 = vld [vmem:[%s2536_s0 + $0x20] sm:$0xff]   ;;  %v1968_v29 = vld [vmem:[%s2512_s6 + $0x8] sm:$0xff]   ;;  %v1971_v42 = vld [vmem:[%s2537_s21 + $0x38] sm:$0xff]  }
  0x16   : > { %v904_v9 = vrot.slane %v903_v7, 4  ;;  %v1969_v30 = vld [vmem:[%s2536_s0] sm:$0xff]   ;;  %1858 = vmatprep.mubr.msk.bf16.mxu0 %vm2055_vm1, %v2054_v5  ;;  %1878 = vmatprep.mubr.msk.bf16.mxu1 %vm2055_vm1, %v2054_v5  ;;  %v1972_v45 = vld [vmem:[%s2537_s21 + $0x30] sm:$0xff]   ;;  %v1973_v47 = vld [vmem:[%s2537_s21 + $0x28] sm:$0xff]  }
  0x17   : > { %1845 = vmatpush3.bf16.msra.mxu0 %v1957_v6  ;;  %1865 = vmatpush3.bf16.msra.mxu1 %v1958_v8  ;;  %v1970_v31 = vld [vmem:[%s2512_s6] sm:$0xff]   ;;  %v1975_v52 = vld [vmem:[%s2537_s21 + $0x18] sm:$0xff]   ;;  %v1976_v54 = vld [vmem:[%s2537_s21 + $0x10] sm:$0xff]  }
  0x18   : > { %v905_v10 = vadd.f32 %v904_v9, %v903_v7  ;;  %1846 = vmatprep.subr.bf16.mxu0 %v2054_v5  ;;  %1866 = vmatprep.subr.bf16.mxu1 %v2054_v5  ;;  %v1692_v36 = vld [vmem:[%s2518_s12] ss:$0 sm:$0xff]  ;;  %v1977_v56 = vld [vmem:[%s2537_s21 + $0x8] sm:$0xff]   ;;  %v1979_v62 = vld [vmem:[%s2514_s8 + $0x38] sm:$0xff]  }
  0x19   : > { %v1693_v38 = vld [vmem:[%s2519_s13] ss:$0 sm:$0xff]  ;;  %v1980_v63 = vld [vmem:[%s2514_s8 + $0x30] sm:$0xff]   ;;  %v1981_v1 = vld [vmem:[%s2514_s8 + $0x28] sm:$0xff]  }
  0x1a   : > { %v906_v11 = vrot.slane %v905_v10, 2  ;;  %v1974_v50 = vld [vmem:[%s2537_s21 + $0x20] sm:$0xff]   ;;  %v1983_v4 = vld [vmem:[%s2514_s8 + $0x18] sm:$0xff]   ;;  %v1984_v6 = vld [vmem:[%s2514_s8 + $0x10] sm:$0xff]  }
  0x1b   : > { %1847 = vmatpush3.bf16.msra.mxu0 %v1959_v20  ;;  %1867 = vmatpush3.bf16.msra.mxu1 %v1960_v21  ;;  %v1978_v59 = vld [vmem:[%s2537_s21] sm:$0xff]   ;;  %v1985_v7 = vld [vmem:[%s2514_s8 + $0x8] sm:$0xff]   ;;  %v1987_v9 = vld [vmem:[%s2516_s10 + $0x38] sm:$0xff]  }
  0x1c   : > { %v907_v12 = vadd.f32 %v906_v11, %v905_v10  ;;  %1848 = vmatprep.subr.bf16.mxu0 %v2054_v5  ;;  %1868 = vmatprep.subr.bf16.mxu1 %v2054_v5  ;;  %v1982_v2 = vld [vmem:[%s2514_s8 + $0x20] sm:$0xff]   ;;  %v1988_v10 = vld [vmem:[%s2516_s10 + $0x30] sm:$0xff]   ;;  %v1989_v11 = vld [vmem:[%s2516_s10 + $0x28] sm:$0xff]  }
  0x1d   : > { %v1986_v8 = vld [vmem:[%s2514_s8] sm:$0xff]  }
  0x1e   : > { %v908_v13 = vrot.slane %v907_v12, 1 }
  0x1f   : > { %1849 = vmatpush3.bf16.msra.mxu0 %v1961_v22  ;;  %1869 = vmatpush3.bf16.msra.mxu1 %v1962_v23 }
  0x20   : > { %v909_v14 = vadd.f32 %v908_v13, %v907_v12  ;;  %1850 = vmatprep.subr.bf16.mxu0 %v2054_v5  ;;  %1870 = vmatprep.subr.bf16.mxu1 %v2054_v5  ;;  %v1990_v12 = vld [vmem:[%s2516_s10 + $0x20] sm:$0xff]   ;;  %v1991_v13 = vld [vmem:[%s2516_s10 + $0x18] sm:$0xff]  }
  0x22   : > { %v910_v15 = vmax.f32 %v909_v14, 1.0  ;;  %v1992_v14 = vld [vmem:[%s2516_s10 + $0x10] sm:$0xff]  }
  0x23   : > { %1851 = vmatpush3.bf16.msra.mxu0 %v1963_v24  ;;  %1871 = vmatpush3.bf16.msra.mxu1 %v1964_v25 }
  0x24   : > { %925 = vperm.xlu1 %1953, %v910_v15   ;;  %1852 = vmatprep.subr.bf16.mxu0 %v2054_v5  ;;  %v1694_v15 = vld [vmem:[%s2538_s22] ss:$0 sm:$0xff] }
  0x25   : > { %1872 = vmatprep.subr.bf16.mxu1 %v2054_v5 }
  0x27   : > { %1853 = vmatpush3.bf16.msra.mxu0 %v1965_v26  ;;  %1873 = vmatpush3.bf16.msra.mxu1 %v1966_v27 }
  0x28   : > { %1854 = vmatprep.subr.bf16.mxu0 %v2054_v5  ;;  %1874 = vmatprep.subr.bf16.mxu1 %v2054_v5 }
  0x2b   : > { %1855 = vmatpush3.bf16.msra.mxu0 %v1967_v28  ;;  %1875 = vmatpush3.bf16.msra.mxu1 %v1968_v29  ;;  %v1704_v28 = vld [vmem:[%s2513_s7] ss:$0 sm:$0xff] }
  0x2c   : > { %1856 = vmatprep.subr.bf16.mxu0 %v2054_v5  ;;  %1876 = vmatprep.subr.bf16.mxu1 %v2054_v5  ;;  %v947_v29 = vld [vmem:[%s2511_s5] sm:$0x1] }
  0x2f   : > { %1857 = vmatpush3.bf16.msra.mxu0 %v1969_v30  ;;  %1877 = vmatpush3.bf16.msra.mxu1 %v1970_v31 }
  0x30   : > { %1882 = vmatprep.subr.bf16.mxu0 %v2054_v5  ;;  %1902 = vmatprep.subr.bf16.mxu1 %v2054_v5 }
  0x90   : > { %v914_v41 = vpop.permute.xlu1 %913 }
  0x9d   : > { %v648_v16 = vpop.xlane.xlu0 %647 }
  0x9e   : > { %v650_v17 = vmul.f32 0.0078125, %v648_v16 }
  0x9f   : > { %v926_v49 = vpop.permute.xlu1 %925 }
  0xa0   : > { %v651_v18 = vsub.f32 %v2175_v0, %v650_v17 }
  0xa2   : > { %v652_v19 = vmul.f32 %v651_v18, %v651_v18 }
  0xa4   : > { %653 = vadd.xlane.f32.xlu0 %v652_v19 }
 0x12d   : > { %v654_v32 = vpop.xlane.xlu0 %653 }
 0x12e   : > { %v655_v33 = vmul.f32 0.0078125, %v654_v32 }
 0x130   : > { %v656_v34 = vadd.f32 1e-05, %v655_v33 }
 0x132   : > { %2035 = vrsqrt.f32 %v656_v34 }
 0x133   : > { %2037 = vrcp.f32 %v926_v49 }
 0x13f   : > { %v2036_v35 = vpop.eup %2035 }
 0x140   : > { %v658_v37 = vmul.f32 %v2036_v35, %v651_v18  ;;  %v2038_v58 = vpop.eup %2037 }
 0x142   : > { %v665_v39 = vmul.f32 %v1692_v36, %v658_v37 }
 0x144   : > { %v672_v40 = vadd.f32 %v1693_v38, %v665_v39  ;;  %v1993_v39 = vld [vmem:[%s2516_s10 + $0x8] sm:$0xff]  }
 0x146   : > { %v916_v43 = vmul.f32 %v914_v41, %v672_v40  ;;  %v689_v44 = vpack.c.bf16 %v672_v40, %v672_v40  ;;  %v1994_v40 = vld [vmem:[%s2516_s10] sm:$0xff]   ;;  %v1142_v41 = vlaneseq }
 0x148   : > { %1859 = vmatmul.mubr.bf16.vlgmr.msra.gmra.mxu0 %v689_v44  ;;  %1879 = vmatmul.mubr.bf16.vlgmr.msra.gmra.mxu1 %v689_v44  ;;  %v917_v46 = vrot.slane %v916_v43, 4 }
 0x149   : > { %1883 = vmatpush3.bf16.msra.mxu0 %v1971_v42  ;;  %1898 = vmatprep.mubr.msk.bf16.mxu0 %vm2055_vm1, %v2054_v5  ;;  %v2371_v42 = vshrl.u32 %v1142_v41, 7  ;;  %v2034_v41 = vld [vmem:[%s2524_s18] sm:$0xff]  }
 0x14a   : > { %1884 = vmatprep.subr.bf16.mxu0 %v2054_v5  ;;  %1918 = vmatprep.mubr.msk.bf16.mxu1 %vm2055_vm1, %v2054_v5  ;;  %v918_v48 = vadd.f32 %v917_v46, %v916_v43  ;;  %v1053_v43 = vld [vmem:[%s2515_s9] sm:$0x1] }
 0x14b   : > { %1903 = vmatpush3.bf16.msra.mxu1 %v1979_v62 }
 0x14c   : > { %v919_v51 = vrot.slane %v918_v48, 2  ;;  %1904 = vmatprep.subr.bf16.mxu1 %v2054_v5 }
 0x14d   : > { %1885 = vmatpush3.bf16.msra.mxu0 %v1972_v45 }
 0x14e   : > { %1886 = vmatprep.subr.bf16.mxu0 %v2054_v5  ;;  %v920_v53 = vadd.f32 %v919_v51, %v918_v48  ;;  %v1729_v51 = vld [vmem:[%s2517_s11] ss:$0 sm:$0xff] }
 0x14f   : > { %1905 = vmatpush3.bf16.msra.mxu1 %v1980_v63 }
 0x150   : > { %v921_v55 = vrot.slane %v920_v53, 1  ;;  %1906 = vmatprep.subr.bf16.mxu1 %v2054_v5 }
 0x151   : > { %1887 = vmatpush3.bf16.msra.mxu0 %v1973_v47 }
 0x152   : > { %1888 = vmatprep.subr.bf16.mxu0 %v2054_v5  ;;  %v922_v57 = vadd.f32 %v921_v55, %v920_v53 }
 0x153   : > { %1907 = vmatpush3.bf16.msra.mxu1 %v1981_v1 }
 0x154   : > { %v929_v60 = vmul.f32 %v2038_v58, %v922_v57  ;;  %1908 = vmatprep.subr.bf16.mxu1 %v2054_v5  ;;  %v1995_v58 = vld [vmem:[%s2522_s16 + $0x70] ss:$8 sps:$4 sm:$0xff]  }
 0x155   : > { %1889 = vmatpush3.bf16.msra.mxu0 %v1974_v50 }
 0x156   : > { %1890 = vmatprep.subr.bf16.mxu0 %v2054_v5  ;;  %v946_v61 = vpack.c.bf16 %v929_v60, %v929_v60  ;;  %v2000_v60 = vld [vmem:[%s2522_s16 + $0x64] ss:$8 sps:$4 sm:$0xff]  }
 0x157   : > { %1909 = vmatpush3.bf16.msra.mxu1 %v1982_v2  ;;  %v2003_v2 = vld [vmem:[%s2522_s16 + $0x54] ss:$8 sps:$4 sm:$0xff]  }
 0x158   : > { %1910 = vmatprep.subr.bf16.mxu1 %v2054_v5 }
 0x159   : > { %1891 = vmatpush3.bf16.msra.mxu0 %v1975_v52 }
 0x15a   : > { %1892 = vmatprep.subr.bf16.mxu0 %v2054_v5 }
 0x15b   : > { %1911 = vmatpush3.bf16.msra.mxu1 %v1983_v4  ;;  %v2001_v4 = vld [vmem:[%s2522_s16 + $0x50] ss:$8 sps:$4 sm:$0xff]  }
 0x15c   : > { %1912 = vmatprep.subr.bf16.mxu1 %v2054_v5 }
 0x15d   : > { %1893 = vmatpush3.bf16.msra.mxu0 %v1976_v54 }
 0x15e   : > { %1894 = vmatprep.subr.bf16.mxu0 %v2054_v5 }
 0x15f   : > { %1913 = vmatpush3.bf16.msra.mxu1 %v1984_v6  ;;  %v2004_v6 = vld [vmem:[%s2522_s16 + $0x40] ss:$8 sps:$4 sm:$0xff]  }
 0x160   : > { %1914 = vmatprep.subr.bf16.mxu1 %v2054_v5 }
 0x161   : > { %1895 = vmatpush3.bf16.msra.mxu0 %v1977_v56 }
 0x162   : > { %1896 = vmatprep.subr.bf16.mxu0 %v2054_v5 }
 0x163   : > { %1915 = vmatpush3.bf16.msra.mxu1 %v1985_v7  ;;  %v2006_v7 = vld [vmem:[%s2522_s16 + $0x44] ss:$8 sps:$4 sm:$0xff]  }
 0x164   : > { %1916 = vmatprep.subr.bf16.mxu1 %v2054_v5 }
 0x165   : > { %1897 = vmatpush3.bf16.msra.mxu0 %v1978_v59  ;;  %v1997_v59 = vld [vmem:[%s2522_s16 + $0x74] ss:$8 sps:$4 sm:$0xff]  }
 0x166   : > { %1922 = vmatprep.subr.bf16.mxu0 %v2054_v5 }
 0x167   : > { %1917 = vmatpush3.bf16.msra.mxu1 %v1986_v8  ;;  %v2009_v8 = vld [vmem:[%s2522_s16 + $0x34] ss:$8 sps:$4 sm:$0xff]  }
 0x168   : > { %1899 = vmatmul.mubr.bf16.vlgmr.msra.gmra.mxu0 %v946_v61  ;;  %1397 = vmatprep.subr.bf16.mxu1 %v1997_v59 }
 0x169   : > { %1938 = vmatprep.mubr.msk.bf16.mxu0 %vm2055_vm1, %v2054_v5  ;;  %1923 = vmatpush3.bf16.msra.mxu0 %v1987_v9  ;;  %v2007_v9 = vld [vmem:[%s2522_s16 + $0x30] ss:$8 sps:$4 sm:$0xff]  }
 0x16a   : > { %1924 = vmatprep.subr.bf16.mxu0 %v2054_v5 }
 0x16d   : > { %1925 = vmatpush3.bf16.msra.mxu0 %v1988_v10  ;;  %v2012_v10 = vld [vmem:[%s2522_s16 + $0x24] ss:$8 sps:$4 sm:$0xff]  }
 0x16e   : > { %1926 = vmatprep.subr.bf16.mxu0 %v2054_v5 }
 0x171   : > { %1927 = vmatpush3.bf16.msra.mxu0 %v1989_v11  ;;  %v2010_v11 = vld [vmem:[%s2522_s16 + $0x20] ss:$8 sps:$4 sm:$0xff]  }
 0x172   : > { %1928 = vmatprep.subr.bf16.mxu0 %v2054_v5 }
 0x175   : > { %1929 = vmatpush3.bf16.msra.mxu0 %v1990_v12  ;;  %v2015_v12 = vld [vmem:[%s2522_s16 + $0x14] ss:$8 sps:$4 sm:$0xff]  }
 0x176   : > { %1930 = vmatprep.subr.bf16.mxu0 %v2054_v5 }
 0x179   : > { %1931 = vmatpush3.bf16.msra.mxu0 %v1991_v13  ;;  %v2013_v13 = vld [vmem:[%s2522_s16 + $0x10] ss:$8 sps:$4 sm:$0xff]  }
 0x17a   : > { %1932 = vmatprep.subr.bf16.mxu0 %v2054_v5 }
 0x17d   : > { %1933 = vmatpush3.bf16.msra.mxu0 %v1992_v14  ;;  %v2018_v14 = vld [vmem:[%s2522_s16 + $0x4] ss:$8 sps:$4 sm:$0xff]  }
 0x17e   : > { %1934 = vmatprep.subr.bf16.mxu0 %v2054_v5 }
 0x181   : > { %1935 = vmatpush3.bf16.msra.mxu0 %v1993_v39  ;;  %v2032_v39 = vld [vmem:[%s2524_s18 + $0x8] sm:$0xff]  }
 0x182   : > { %1936 = vmatprep.subr.bf16.mxu0 %v2054_v5 }
 0x185   : > { %1937 = vmatpush3.bf16.msra.mxu0 %v1994_v40  ;;  %v2033_v40 = vld [vmem:[%s2524_s18 + $0x40] sm:$0xff]  }
 0x208   : > { %v779_v16 = vpop.f32.mrf.mxu0  ;;  %v896_v17 = vpop.f32.mrf.mxu1 }
 0x209   : > { %v780_v18 = vadd.f32 %v1694_v15, %v779_v16  ;;  %v897_v31 = vadd.f32 %v1704_v28, %v896_v17  ;;  %v2016_v15 = vld [vmem:[%s2522_s16] ss:$8 sps:$4 sm:$0xff]   ;;  %v2019_v16 = vld [vmem:[%s2524_s18 + $0x78] sm:$0xff]  }
 0x20a   : > { %v1860_v19 = vpop.f32.mrf.mxu0  ;;  %v1880_v20 = vpop.f32.mrf.mxu1  ;;  %v2020_v17 = vld [vmem:[%s2524_s18 + $0x38] sm:$0xff]   ;;  %1820 = vmatprep.subr.bf16.mxu0 %v2019_v16 }
 0x20b   : > { %v1703_v21 = vmul.f32 -1.442695, %v780_v18  ;;  %v2021_v18 = vld [vmem:[%s2524_s18 + $0x70] sm:$0xff]   ;;  %v2023_v20 = vld [vmem:[%s2524_s18 + $0x68] sm:$0xff]  }
 0x20c   : > { %v782_v22 = vpop.f32.mrf.mxu0  ;;  %v899_v23 = vpop.f32.mrf.mxu1  ;;  %v2022_v19 = vld [vmem:[%s2524_s18 + $0x30] sm:$0xff]  }
 0x20d   : > { %2039 = vpow2.f32 %v1703_v21  ;;  %v2024_v21 = vld [vmem:[%s2524_s18 + $0x28] sm:$0xff]   ;;  %v2025_v22 = vld [vmem:[%s2524_s18 + $0x60] sm:$0xff]  }
 0x20e   : > { %v1861_v24 = vpop.f32.mrf.mxu0  ;;  %v1881_v25 = vpop.f32.mrf.mxu1  ;;  %v2026_v23 = vld [vmem:[%s2524_s18 + $0x20] sm:$0xff]  }
 0x20f   : > { %v2027_v24 = vld [vmem:[%s2524_s18 + $0x58] sm:$0xff]  }
 0x210   : > { %v2028_v25 = vld [vmem:[%s2524_s18 + $0x18] sm:$0xff]  }
 0x21a   : > { %v2040_v26 = vpop.eup %2039 }
 0x21b   : > { %v788_v27 = vadd.f32 1.0, %v2040_v26  ;;  %v2029_v26 = vld [vmem:[%s2524_s18 + $0x50] sm:$0xff]  }
 0x21d   : > { %2041 = vrcp.f32 %v788_v27  ;;  %v2030_v27 = vld [vmem:[%s2524_s18 + $0x10] sm:$0xff]  }
 0x228   : > { %v1030_v30 = vpop.f32.mrf.mxu0 }
 0x229   : > { %v1031_v32 = vadd.f32 %v1030_v30, %v947_v29 }
 0x22a   : > { %v2042_v33 = vpop.eup %2041  ;;  %v1900_v34 = vpop.f32.mrf.mxu0 }
 0x22b   : > { %v1146_v35 = vmul.f32 %v2042_v33, %v897_v31  ;;  %v1052_v36 = vpack.c.bf16 %v1031_v32, %v1031_v32  ;;  %v1738_v32 = vld [vmem:[%s2520_s14] ss:$0 sm:$0xff] }
 0x22c   : > { %v1033_v37 = vpop.f32.mrf.mxu0  ;;  %v1739_v34 = vld [vmem:[%s2521_s15] ss:$0 sm:$0xff] }
 0x22d   : > { %1919 = vmatmul.mubr.bf16.vlgmr.msra.gmra.mxu1 %v1052_v36 }
 0x22e   : > { %v1901_v38 = vpop.f32.mrf.mxu0  ;;  %1429 = vmatprep.mubr.bf16.mxu1 %v2053_v3  ;;  %v1144_v3 = vsub.s32 0, %v2371_v42  ;;  %1398 = vmatpush1.bf16.msra.mxu1 %v1995_v58 }
 0x22f   : > { %1399 = vmatprep.subr.bf16.mxu1 %v2000_v60  ;;  %v2031_v38 = vld [vmem:[%s2524_s18 + $0x48] sm:$0xff]  }
 0x2ed   : > { %v1136_v44 = vpop.f32.mrf.mxu1 }
 0x2ee   : > { %v1137_v45 = vadd.f32 %v1136_v44, %v1053_v43  ;;  %v1305_v43 = vld [vmem:[%s2523_s17] sm:$0x3]  ;;  %v1313_v44 = vsub.s32 1, %v2371_v42 }
 0x2ef   : > { %v1920_v46 = vpop.f32.mrf.mxu1  ;;  %v1756_v42 = vld [vmem:[%s2525_s19] ss:$0 sm:$0xff] }
 0x2f0   : > { %v1145_v5 = vrot.slane %v1137_v45, %v1144_v3  ;;  %v1310_v45 = vrot.slane %v1305_v43, %v1144_v3  ;;  %v1314_v46 = vrot.slane %v1305_v43, %v1313_v44 }
 0x2f1   : > { %v1139_v47 = vpop.f32.mrf.mxu1 }
 0x2f2   : > { %v1147_v48 = vadd.f32 %v1146_v35, %v1145_v5 }
 0x2f3   : > { %v1921_v49 = vpop.f32.mrf.mxu1 }
 0x2f4   : > { %v1164_v50 = vpack.c.bf16 %v1147_v48, %v1147_v48 }
 0x2f6   : > { %1939 = vmatmul.mubr.bf16.vlgmr.msra.gmra.mxu0 %v1164_v50 }
 0x2f7   : > { %1821 = vmatpush3.bf16.msra.mxu0 %v2020_v17 }
 0x2f8   : > { %1822 = vmatprep.subr.bf16.mxu0 %v2021_v18 }
 0x2fb   : > { %1823 = vmatpush3.bf16.msra.mxu0 %v2022_v19 }
 0x2fc   : > { %1824 = vmatprep.subr.bf16.mxu0 %v2023_v20 }
 0x2ff   : > { %1825 = vmatpush3.bf16.msra.mxu0 %v2024_v21 }
 0x300   : > { %1826 = vmatprep.subr.bf16.mxu0 %v2025_v22 }
 0x303   : > { %1827 = vmatpush3.bf16.msra.mxu0 %v2026_v23 }
 0x304   : > { %1828 = vmatprep.subr.bf16.mxu0 %v2027_v24 }
 0x307   : > { %1829 = vmatpush3.bf16.msra.mxu0 %v2028_v25 }
 0x308   : > { %1830 = vmatprep.subr.bf16.mxu0 %v2029_v26 }
 0x30b   : > { %1831 = vmatpush3.bf16.msra.mxu0 %v2030_v27 }
 0x30c   : > { %1832 = vmatprep.subr.bf16.mxu0 %v2031_v38 }
 0x30f   : > { %1833 = vmatpush3.bf16.msra.mxu0 %v2032_v39 }
 0x310   : > { %1834 = vmatprep.subr.bf16.mxu0 %v2033_v40 }
 0x313   : > { %1835 = vmatpush3.bf16.msra.mxu0 %v2034_v41 }
 0x3b6   : > { %v1254_v52 = vpop.f32.mrf.mxu0 }
 0x3b7   : > { %v1255_v53 = vadd.f32 %v1729_v51, %v1254_v52 }
 0x3b8   : > { %v1940_v54 = vpop.f32.mrf.mxu0 }
 0x3b9   : > { %v2383_v55 = vadd.f32 %v1255_v53, %v2175_v0  ;;  %v1998_v0 = vld [vmem:[%s2522_s16 + $0x60] ss:$8 sps:$4 sm:$0xff]  }
 0x3ba   : > { %v1257_v56 = vpop.f32.mrf.mxu0  ;;  %1400 = vmatpush1.bf16.msra.mxu1 %v1998_v0 }
 0x3bb   : > { %1263 = vadd.xlane.f32.xlu0 %v2383_v55  ;;  %1401 = vmatprep.subr.bf16.mxu1 %v2003_v2 }
 0x3bc   : > { %v1941_v57 = vpop.f32.mrf.mxu0 }
 0x3be   : > { %1402 = vmatpush1.bf16.msra.mxu1 %v2001_v4 }
 0x3bf   : > { %1403 = vmatprep.subr.bf16.mxu1 %v2006_v7 }
 0x3c2   : > { %1404 = vmatpush1.bf16.msra.mxu1 %v2004_v6 }
 0x3c3   : > { %1405 = vmatprep.subr.bf16.mxu1 %v2009_v8 }
 0x3c6   : > { %1406 = vmatpush1.bf16.msra.mxu1 %v2007_v9 }
 0x3c7   : > { %1407 = vmatprep.subr.bf16.mxu1 %v2012_v10 }
 0x3ca   : > { %1408 = vmatpush1.bf16.msra.mxu1 %v2010_v11 }
 0x3cb   : > { %1409 = vmatprep.subr.bf16.mxu1 %v2015_v12 }
 0x3ce   : > { %1410 = vmatpush1.bf16.msra.mxu1 %v2013_v13 }
 0x3cf   : > { %1411 = vmatprep.subr.bf16.mxu1 %v2018_v14 }
 0x3d2   : > { %1412 = vmatpush1.bf16.msra.mxu1 %v2016_v15 }
 0x444   : > { %v1264_v61 = vpop.xlane.xlu0 %1263 }
 0x445   : > { %v1265_v62 = vmul.f32 0.0078125, %v1264_v61 }
 0x447   : > { %v1266_v63 = vsub.f32 %v2383_v55, %v1265_v62 }
 0x449   : > { %v1267_v1 = vmul.f32 %v1266_v63, %v1266_v63 }
 0x44b   : > { %1268 = vadd.xlane.f32.xlu1 %v1267_v1 }
 0x4d4   : > { %v1269_v28 = vpop.xlane.xlu1 %1268 }
 0x4d5   : > { %v1270_v29 = vmul.f32 0.0078125, %v1269_v28 }
 0x4d7   : > { %v1271_v30 = vadd.f32 1e-05, %v1270_v29 }
 0x4d9   : > { %2043 = vrsqrt.f32 %v1271_v30 }
 0x4e6   : > { %v2044_v31 = vpop.eup %2043 }
 0x4e7   : > { %v1273_v33 = vmul.f32 %v2044_v31, %v1266_v63 }
 0x4e9   : > { %v1280_v35 = vmul.f32 %v1738_v32, %v1273_v33 }
 0x4eb   : > { %v1287_v36 = vadd.f32 %v1739_v34, %v1280_v35 }
 0x4ed   : > { %v1304_v37 = vpack.c.bf16 %v1287_v36, %v1287_v36 }
 0x4ef   : > { %1430 = vmatmul.mubr.bf16.vlgmr.msra.gmra.mxu1 %v1304_v37 }
 0x5af   : > { %v1431_v5 = vpop.f32.mrf.mxu1 }
 0x5b0   : > { %v1432_v47 = vadd.f32 %v1431_v5, %v1310_v45 }
 0x5b1   : > { %v1433_v48 = vpop.f32.mrf.mxu1 }
 0x5b2   : > { %v1434_v49 = vadd.f32 %v1433_v48, %v1314_v46  ;;  %v1438_v50 = vmax.f32 %v1432_v47, 0.0 }
 0x5b3   : > { %v1435_v51 = vpop.f32.mrf.mxu1 }
 0x5b4   : > { %v1439_v52 = vmax.f32 %v1434_v49, 0.0  ;;  %v1472_v56 = vpack.c.bf16 %v1438_v50, %v1438_v50 }
 0x5b5   : > { %v1436_v53 = vpop.f32.mrf.mxu1 }
 0x5b6   : > { %v1473_v54 = vpack.c.bf16 %v1439_v52, %v1439_v52 }
 0x5b8   : > { %1609 = vmatprep.mubr.bf16.mxu0 %v1473_v54 }
 0x5b9   : > { %1610 = vmatmul.mubr.bf16.vlgmr.msra.gmra.mxu0 %v1472_v56 }
 0x679   : > { %v1836_v57 = vpop.f32.mrf.mxu0 }
 0x67b   : > { %v1837_v3 = vpop.f32.mrf.mxu0 }
 0x67c   : > { %v1838_v58 = vadd.f32 %v1837_v3, %v1836_v57 }
 0x67d   : > { %v1839_v59 = vpop.f32.mrf.mxu0 }
 0x67e   : > { %v1612_v60 = vadd.f32 %v1838_v58, %v1756_v42 }
 0x67f   : > { %v1840_v0 = vpop.f32.mrf.mxu0 }
 0x680   : > { %v1617_v61 = vadd.f32 %v1612_v60, %v2383_v55 }
 0x682   : > { %1618 = vst [vmem:[%s641_s30] sm:$0xff] %v1617_v61 }
 0x683 PF: > { %s30_s1 = sadd.s32 1, %s2051_s1  }
 0x684   : > { %p27_p4 = scmp.ge.s32.totalorder %s30_s1, 4  }
 0x686   :  { %29 = sbr.rel (!%p27_p4) target bundleno = 6 (0x6), region = 133 }

</bundles_post_ra>
